<compile_context>
chip_gen: v7x
topology: tpu7x:2x2x1
jax: 0.10.0
libtpu: 0.0.40
codegen_flags: <defaults>
</compile_context>

<pallas_src>
import functools

import jax
import jax.numpy as jnp
from jax.experimental import pallas as pl
from jax.experimental.pallas import tpu as pltpu

_SUBLANES = 8
_BLOCK_BUDGET_BYTES = 4 * 1024 * 1024   # per-block budget, measured in f32 bytes
_VMEM_LIMIT_BYTES = 32 * 1024 * 1024    # 2*in + 2*out + f32 temps stays well under


def _rmsnorm_kernel(gs_ref, x_ref, o_ref, *, eps):
    # gs_ref: (1,) scalar (g * sqrt(dim)) in SMEM via scalar prefetch.
    # x_ref : (tile_rows, dim) block in VMEM; last dim is the full feature dim.
    x = x_ref[...].astype(jnp.float32)
    sq_sum = jnp.sum(x * x, axis=-1, keepdims=True)          # (tile_rows, 1)
    # F.normalize clamp: x / max(||x||, eps) == x * rsqrt(max(||x||^2, eps^2)).
    r = jax.lax.rsqrt(jnp.maximum(sq_sum, eps * eps)) * gs_ref[0]
    o_ref[...] = (x * r).astype(o_ref.dtype)                  # single broadcast mul


def _round_up(a, b):
    return ((a + b - 1) // b) * b


def _num_tensorcores():
    """Best-effort TensorCore count of the local device (1 on failure)."""
    try:
        d = jax.devices()[0]
        for attr in ("num_cores", "core_count"):
            v = getattr(d, attr, None)
            if isinstance(v, int) and v > 0:
                return v
    except Exception:
        pass
    return 1


def _pick_tile_rows(rows, dim, itemsize, num_cores):
    """Row tile: fits the (f32-sized) block budget, multiple of 8, megacore-aware."""
    eff_itemsize = max(itemsize, 4)  # kernel upcasts to f32 internally
    tile = _BLOCK_BUDGET_BYTES // max(1, dim * eff_itemsize)
    tile = max(_SUBLANES, (tile // _SUBLANES) * _SUBLANES)
    if num_cores >= 2 and rows > _SUBLANES:
        # Give each TensorCore several pipelined steps (not exactly one) so the
        # auto-pipeline can overlap DMA and compute on v7x megacore.
        target_steps = 4 * num_cores
        per_step = _round_up(pl.cdiv(rows, target_steps), _SUBLANES)
        tile = min(tile, max(per_step, _SUBLANES))
    tile = min(tile, _round_up(rows, _SUBLANES))
    return max(tile, _SUBLANES)


def rmsnorm(x, g, *, eps=1e-12):
    """RMSNorm over the last axis of x. g is a scalar parameter array of shape (1,)."""
    orig_shape = x.shape
    dim = orig_shape[-1]
    scale = float(dim) ** 0.5

    rows = 1
    for s in orig_shape[:-1]:
        rows *= s
    x2d = x.reshape(rows, dim)

    itemsize = jnp.dtype(x2d.dtype).itemsize
    tile_rows = _pick_tile_rows(rows, dim, itemsize, _num_tensorcores())
    grid = pl.cdiv(rows, tile_rows)

    # Fold sqrt(dim) into the prefetched scalar: one SMEM multiply in-kernel.
    g_scaled = (jnp.asarray(g, dtype=jnp.float32) * scale).reshape(1)

    kernel = functools.partial(_rmsnorm_kernel, eps=eps)

    out2d = pl.pallas_call(
        kernel,
        out_shape=jax.ShapeDtypeStruct((rows, dim), x.dtype),
        grid_spec=pltpu.PrefetchScalarGridSpec(
            num_scalar_prefetch=1,
            grid=(grid,),
            in_specs=[
                # Last dim == full array dim -> exempt from 128-divisibility,
                # no host-side pad/slice round trips.
                pl.BlockSpec((tile_rows, dim), lambda i, gs: (i, 0)),
            ],
            out_specs=pl.BlockSpec((tile_rows, dim), lambda i, gs: (i, 0)),
        ),
        compiler_params=pltpu.CompilerParams(
            dimension_semantics=("parallel",),
            vmem_limit_bytes=_VMEM_LIMIT_BYTES,
        ),
    )(g_scaled, x2d)

    return out2d.reshape(orig_shape)


def rmsnorm_ref(x, g, eps=1e-12):
    """Pure-JAX reference matching PyTorch F.normalize(x, dim=-1) * sqrt(dim) * g."""
    dim = x.shape[-1]
    norm = jnp.sqrt(jnp.sum(jnp.square(x.astype(jnp.float32)), axis=-1, keepdims=True))
    denom = jnp.maximum(norm, eps)
    return (x / denom * (dim ** 0.5) * g.reshape(())).astype(x.dtype)


if __name__ == "__main__":
    key = jax.random.PRNGKey(0)
    batch, seq, hidden = 2, 8, 32
    x = jax.random.normal(key, (batch, seq, hidden), dtype=jnp.float32)

    # Parameter init matches nn.Parameter(torch.ones(1)).
    g = jnp.ones((1,), dtype=jnp.float32)

    out = rmsnorm(x, g)
    out = jax.block_until_ready(out)

    ref = rmsnorm_ref(x, g)
    assert out.shape == x.shape
    assert jnp.allclose(out, ref, atol=1e-5, rtol=1e-5), "mismatch vs reference"

    print("KERNEL_OK")
</pallas_src>

<mosaic_0001>
module attributes {stable_mosaic.version = 11 : i64} {
  func.func @_rmsnorm_kernel(%arg0: i32, %arg1: memref<1xf32, #tpu.memory_space<smem>>, %arg2: memref<16x32xf32, #tpu.memory_space<vmem>>, %arg3: memref<16x32xf32, #tpu.memory_space<vmem>>) attributes {dimension_semantics = [#tpu.dimension_semantics<parallel>], iteration_bounds = array<i64: 1>, scalar_prefetch = 1 : i64, scratch_operands = 0 : i64, tpu.core_type = #tpu.core_type<tc>, window_params = [{transform_indices = @transform_0, window_bounds = array<i64: 16, 32>}, {transform_indices = @transform_1, window_bounds = array<i64: 16, 32>}]} {
    %c0 = arith.constant 0 : index
    %c0_0 = arith.constant 0 : index
    %0 = vector.load %arg2[%c0, %c0_0] : memref<16x32xf32, #tpu.memory_space<vmem>>, vector<16x32xf32>
    %1 = arith.mulf %0, %0 : vector<16x32xf32>
    %cst = arith.constant dense<0.000000e+00> : vector<16xf32>
    %2 = vector.multi_reduction <add>, %1, %cst [1] : vector<16x32xf32> to vector<16xf32>
    %3 = vector.shape_cast %2 : vector<16xf32> to vector<16x1xf32>
    %cst_1 = arith.constant 1.000000e-24 : f32
    %4 = vector.broadcast %cst_1 : f32 to vector<16x1xf32>
    %5 = arith.maximumf %3, %4 : vector<16x1xf32>
    %6 = math.rsqrt %5 : vector<16x1xf32>
    %c0_2 = arith.constant 0 : index
    %7 = memref.load %arg1[%c0_2] : memref<1xf32, #tpu.memory_space<smem>>
    %8 = vector.broadcast %7 : f32 to vector<16x1xf32>
    %9 = arith.mulf %6, %8 : vector<16x1xf32>
    %10 = vector.broadcast %9 : vector<16x1xf32> to vector<16x32xf32>
    %11 = arith.mulf %0, %10 : vector<16x32xf32>
    %c0_3 = arith.constant 0 : index
    %c0_4 = arith.constant 0 : index
    %12 = vector.load %arg3[%c0_3, %c0_4] : memref<16x32xf32, #tpu.memory_space<vmem>>, vector<16x32xf32>
    tpu.vector_store %arg3[%c0_3, %c0_4], %11 {strides = array<i32>} : memref<16x32xf32, #tpu.memory_space<vmem>>, vector<16x32xf32>,
    return
  }
  func.func @transform_0(%arg0: i32, %arg1: memref<1xf32, #tpu.memory_space<smem>>) -> (i32, i32) {
    %c0_i32 = arith.constant 0 : i32
    %c0_i32_0 = arith.constant 0 : i32
    return %arg0, %c0_i32 : i32, i32
  }
  func.func @transform_1(%arg0: i32, %arg1: memref<1xf32, #tpu.memory_space<smem>>) -> (i32, i32) {
    %c0_i32 = arith.constant 0 : i32
    %c0_i32_0 = arith.constant 0 : i32
    return %arg0, %c0_i32 : i32, i32
  }
}

</mosaic_0001>

<bundles_post_ra>
// kernel: tpu_custom_call.1
= control target key start
LH: loop header
LB: loop body
LE: loop exit
PB: predicated region body
PF: predicated region fallthrough
CT: control target
= control target key end

     0   :  { %8 = vsyncpa [#allocation5], 0  ;;  %s177_s0 = inlined_call_operand.<no memory space> [shape: f32[1], index: 0, kind: input, shape index: {}]   ;;  %s178_s1 = inlined_call_operand.hbm [shape: f32[16,32], index: 1, kind: input, shape index: {}]   ;;  %s179_s2 = inlined_call_operand.hbm [shape: f32[16,32], index: 2, kind: output, shape index: {}]  }
   0x1   :  { %9 = vsyncpa [#allocation6], 0  ;;  %s121_s9 = smov [#allocation4]   ;;  %s73_s13 = scalar_lea.hbm %s178_s1, 256 }
   0x2   :  { %s15_s10 = sshll.u32 %s121_s9, 4  ;;  %p74_p0 = scmp.ne.s32.totalorder %s178_s1, %s73_s13  ;;  %s16_s10 = int_to_ptr.vmem [resolvable:$true] %s15_s10 }
   0x3   :  { %p77_p1 = scmp.lt.u32.totalorder %s73_s13, %s178_s1 }
   0x5   :  { %p79_p2 = pnand %p77_p1, %p74_p0 }
   0x7   :  { %82 = shalt.err (!%p79_p2)
}
   0x8   :  { %s83_s18 = scalar_lea.vmem %s16_s10, 256  ;;  %p88_p4 = scmp.lt.s32.totalorder %s16_s10, %s16_s10 }
   0x9   :  { %p84_p3 = scmp.ne.s32.totalorder %s16_s10, %s83_s18  ;;  %p89_p5 = scmp.lt.s32.totalorder %s83_s18, %s83_s18 }
   0xb   :  { %p90_p6 = por %p89_p5, %p88_p4 }
   0xd   :  { %p91_p7 = pnand %p90_p6, %p84_p3 }
   0xf   :  { %94 = shalt.err (!%p91_p7)
}
  0x10   :  { %s122_s19 = smov 128   ;;  %s123_s20 = smov 8  }
  0x11   :  { %21 = dma.hbm_to_vmem [thread:$0]  %s178_s1, 256, %s16_s10, [#allocation5], %s122_s19, %s122_s19, %s123_s20  }
  0x12   :  { %117 = dma.done.wait [#allocation5], 256  }
  0x13   :  { %118 = vsyncadd [#allocation5], 4294967040  ;;  %v25_v0 = vld [vmem:[#allocation4] sm:$0xff]  ;;  %vm29_vm0 = vcmask 261120   ;;  %v26_v1 = vld [vmem:[#allocation4 + $0x8] sm:$0xff]  ;;  %v41_v10 = vstv %s177_s0  ;;  %s124_s24 = smov [#allocation7]  }
  0x14   :  { %v27_v2 = vmul.f32 %v25_v0, %v25_v0  ;;  %v28_v3 = vmul.f32 %v26_v1, %v26_v1  ;;  %s53_s25 = sshll.u32 %s124_s24, 4  ;;  %s54_s25 = int_to_ptr.vmem [resolvable:$true] %s53_s25 }
  0x15   :  { %s95_s26 = scalar_lea.vmem %s54_s25, 256  ;;  %p100_p9 = scmp.lt.s32.totalorder %s54_s25, %s54_s25 }
  0x16   :  { %v30_v4 = vsel %vm29_vm0, %v27_v2, 0.0  ;;  %v33_v5 = vsel %vm29_vm0, %v28_v3, 0.0  ;;  %p96_p8 = scmp.ne.s32.totalorder %s54_s25, %s95_s26  ;;  %p101_p10 = scmp.lt.s32.totalorder %s95_s26, %s95_s26 }
  0x17   :  { %31 = vadd.xlane.f32.xlu0 %v30_v4 }
  0x18   :  { %p102_p11 = por %p101_p10, %p100_p9 }
  0x1a   :  { %p103_p12 = pnand %p102_p11, %p96_p8 }
  0x1b   :  { %34 = vadd.xlane.f32.xlu0 %v33_v5 }
  0xa4   :  { %v32_v6 = vpop.xlane.xlu0 %31 }
  0xa5   :  { %v36_v7 = vmax.f32 %v32_v6, 1e-24 }
  0xa7   :  { %69 = vrsqrt.f32 %v36_v7 }
  0xa8   :  { %v35_v8 = vpop.xlane.xlu0 %34 }
  0xa9   :  { %v37_v9 = vmax.f32 %v35_v8, 1e-24 }
  0xab   :  { %71 = vrsqrt.f32 %v37_v9 }
  0xb1   :  { %v70_v11 = vpop.eup %69 }
  0xb2   :  { %v42_v12 = vmul.f32 %v70_v11, %v41_v10 }
  0xb4   :  { %v44_v13 = vmul.f32 %v42_v12, %v25_v0 }
  0xb5   :  { %v72_v14 = vpop.eup %71 }
  0xb6   :  { %v43_v15 = vmul.f32 %v72_v14, %v41_v10  ;;  %46 = vst.msk [vmem:[#allocation7] sm:$0xff] %vm29_vm0, %v44_v13 }
  0xb8   :  { %v45_v16 = vmul.f32 %v43_v15, %v26_v1 }
  0xba   :  { %47 = vst.msk [vmem:[#allocation7 + $0x8] sm:$0xff] %vm29_vm0, %v45_v16 }
  0xbb   :  { %106 = shalt.err (!%p103_p12)
}
  0xbc   :  { %s107_s28 = scalar_lea.hbm %s179_s2, 256 }
  0xbd   :  { %p108_p13 = scmp.ne.s32.totalorder %s179_s2, %s107_s28  ;;  %p111_p0 = scmp.lt.u32.totalorder %s107_s28, %s179_s2 }
  0xbf   :  { %p113_p1 = pnand %p111_p0, %p108_p13 }
  0xc1   :  { %116 = shalt.err (!%p113_p1)
}
  0xc2   :  { %59 = dma.vmem_to_hbm [thread:$0]  %s54_s25, 256, %s179_s2, [#allocation6], %s122_s19, %s122_s19, %s123_s20  }
  0xc3   :  { %119 = dma.done.wait [#allocation6], 256  }
  0xc4   :  { %120 = vsyncadd [#allocation6], 4294967040 }
  0xc5   :  { %63 = vsyncpa [#allocation5], 1 }
  0xc6   :  { %64 = vsyncpa [#allocation6], 1 }

</bundles_post_ra>
